<compile_context>
chip_gen: v6e
topology: v6e:2x2x1
jax: 0.10.0
libtpu: 0.0.40
codegen_flags: <defaults>
</compile_context>

<pallas_src>
import functools

import jax
import jax.numpy as jnp
from jax.experimental import pallas as pl
from jax.experimental.pallas import tpu as pltpu


def _round_up(x, m):
    return (x + m - 1) // m * m


def _vmem_budget():
    """Generation-aware (tile budget, scoped-vmem limit) in bytes."""
    try:
        cap = int(pltpu.get_tpu_info().vmem_capacity_bytes)
    except Exception:
        cap = 64 * 1024 * 1024                        # conservative fallback
    if cap >= 96 * 1024 * 1024:                       # v5e / v6e: 128 MiB VMEM
        return 80 * 1024 * 1024, 100 * 1024 * 1024
    return 40 * 1024 * 1024, 48 * 1024 * 1024         # v7x: 64 MiB VMEM


def _choose_hw_tile(hw, n_slabs, channels, budget_bytes, dtype_bytes,
                    max_lanes=32768):
    """Largest 128-multiple spatial tile whose double-buffered working set
    (n_slabs blocks of (channels, tile) per buffer) stays under budget_bytes.
    No divisibility requirement on hw: ragged last tiles are masked (pass 1)
    or handled by masked edge-block stores (pass 2)."""
    per_lane = 2 * n_slabs * channels * dtype_bytes   # x2: double buffering
    fit = (budget_bytes // per_lane) // 128 * 128
    tile = min(max(fit, 128), max_lanes, _round_up(hw, 128))
    return max(128, (tile // 128) * 128)


def _pool_sum_kernel(*refs, height, hw, hw_tile, n_half, needs_mask):
    # refs: height x (1, C, HW_TILE) inputs, (1, 1, 1, C) output,
    #       (C, 128) f32 partial-sum scratch.
    x_refs = refs[:height]
    out_ref = refs[height]
    acc_ref = refs[height + 1]

    p = pl.program_id(1)          # spatial half (for v7x megacore)
    t = pl.program_id(2)          # tile within the half (reduction axis)

    @pl.when(t == 0)
    def _():
        acc_ref[...] = jnp.zeros_like(acc_ref)

    s = x_refs[0][0].astype(jnp.float32)              # (C, HW_TILE)
    for h in range(1, height):
        s = s + x_refs[h][0].astype(jnp.float32)

    if needs_mask:
        # Zero lanes past the true spatial extent: covers the ragged last
        # tile AND any clamped duplicate tile from the 2-way spatial split.
        start = (p * n_half + t) * hw_tile
        lane = jax.lax.broadcasted_iota(jnp.int32, s.shape, dimension=1)
        s = jnp.where(lane < (hw - start), s, 0.0)

    # Fold lane-tiles into the (C, 128) accumulator: lane-aligned static
    # slices + VPU adds only; the cross-lane reduce happens once per half.
    folded = s[:, 0:128]
    for j in range(1, hw_tile // 128):
        folded = folded + s[:, j * 128:(j + 1) * 128]
    acc_ref[...] += folded

    @pl.when(t == pl.num_programs(2) - 1)
    def _():
        out_ref[...] = jnp.sum(acc_ref[...], axis=-1)[None, None, None, :]


def _combine_kernel(*refs, height):
    # refs: (1, C, height) attn, height x (1, C, HW_TILE) inputs,
    #       (1, C, HW_TILE) output.  Edge-block OOB lanes are dropped on store.
    attn_ref = refs[0]
    x_refs = refs[1:1 + height]
    out_ref = refs[1 + height]

    attn = attn_ref[0]                                    # (C, height), f32
    acc = x_refs[0][0].astype(jnp.float32) * attn[:, 0:1]
    for h in range(1, height):
        acc = acc + x_refs[h][0].astype(jnp.float32) * attn[:, h:h + 1]
    out_ref[0] = acc.astype(out_ref.dtype)


def sk_fusion_pallas(in_feats, w1, w2):
    """in_feats: list of `height` arrays, each (B, C, H, W) (f32 or bf16).
    w1: (d, C) f32 (squeeze 1x1 conv), w2: (C*height, d) f32 (excite conv)."""
    height = len(in_feats)
    B, C, H, W = in_feats[0].shape
    HW = H * W
    dtype = in_feats[0].dtype
    itemsize = jnp.dtype(dtype).itemsize

    budget_bytes, vmem_limit = _vmem_budget()

    # Flatten spatial dims (free reshape, no copy / no padding).
    xs = [f.reshape(B, C, HW) for f in in_feats]

    # ---- Pass 1: pooled channel sums ---------------------------------------
    hw_tile1 = _choose_hw_tile(HW, height, C, budget_bytes, itemsize)
    n_tiles1 = pl.cdiv(HW, hw_tile1)
    n_split = 2 if n_tiles1 >= 2 else 1        # 2-way split keeps v7x TC1 busy
    n_half = pl.cdiv(n_tiles1, n_split)
    needs_mask1 = n_split * n_half * hw_tile1 > HW

    def x_map1(b, p, t):
        # Clamp so no block starts fully out of bounds; duplicates are masked.
        ti = jnp.minimum(p * n_half + t, n_tiles1 - 1)
        return (b, 0, ti)

    pooled_parts = pl.pallas_call(
        functools.partial(_pool_sum_kernel, height=height, hw=HW,
                          hw_tile=hw_tile1, n_half=n_half,
                          needs_mask=needs_mask1),
        out_shape=jax.ShapeDtypeStruct((B, n_split, 1, C), jnp.float32),
        grid_spec=pltpu.PrefetchScalarGridSpec(
            num_scalar_prefetch=0,
            grid=(B, n_split, n_half),
            in_specs=[pl.BlockSpec((1, C, hw_tile1), x_map1)
                      for _ in range(height)],
            out_specs=pl.BlockSpec((1, 1, 1, C), lambda b, p, t: (b, p, 0, 0)),
            scratch_shapes=[pltpu.VMEM((C, 128), jnp.float32)],
        ),
        compiler_params=pltpu.CompilerParams(
            dimension_semantics=("parallel", "parallel", "arbitrary"),
            vmem_limit_bytes=vmem_limit),
        cost_estimate=pl.CostEstimate(
            flops=height * B * C * HW,
            transcendentals=0,
            bytes_accessed=height * B * C * HW * itemsize + B * n_split * C * 4),
    )(*xs)

    # ---- Tiny squeeze-excite MLP + softmax (plain JAX, d*C per batch) ------
    pooled = jnp.sum(pooled_parts[:, :, 0, :], axis=1) / float(HW)   # (B, C)
    h1 = jnp.maximum(pooled @ w1.T, 0.0)                             # (B, d)
    logits = (h1 @ w2.T).reshape(B, height, C)                       # (B, h, C)
    attn = jax.nn.softmax(logits, axis=1)                            # (B, h, C)
    attn_t = jnp.transpose(attn, (0, 2, 1)).astype(jnp.float32)      # (B, C, h)

    # ---- Pass 2: weighted recombination over HW tiles ----------------------
    hw_tile2 = _choose_hw_tile(HW, height + 1, C, budget_bytes, itemsize)
    n_tiles2 = pl.cdiv(HW, hw_tile2)

    out = pl.pallas_call(
        functools.partial(_combine_kernel, height=height),
        out_shape=jax.ShapeDtypeStruct((B, C, HW), dtype),
        grid_spec=pltpu.PrefetchScalarGridSpec(
            num_scalar_prefetch=0,
            grid=(B, n_tiles2),
            in_specs=(
                [pl.BlockSpec((1, C, height), lambda b, t: (b, 0, 0))] +
                [pl.BlockSpec((1, C, hw_tile2), lambda b, t: (b, 0, t))
                 for _ in range(height)]),
            out_specs=pl.BlockSpec((1, C, hw_tile2), lambda b, t: (b, 0, t)),
        ),
        compiler_params=pltpu.CompilerParams(
            dimension_semantics=("parallel", "parallel"),
            vmem_limit_bytes=vmem_limit),
        cost_estimate=pl.CostEstimate(
            flops=2 * height * B * C * HW,
            transcendentals=0,
            bytes_accessed=(height + 1) * B * C * HW * itemsize
            + B * C * height * 4),
    )(attn_t, *xs)

    return out.reshape(B, C, H, W)


def sk_fusion_reference(in_feats, w1, w2):
    """Pure-JAX reference mirroring the PyTorch forward."""
    height = len(in_feats)
    B, C, H, W = in_feats[0].shape
    x = jnp.stack(in_feats, axis=1)                       # (B, height, C, H, W)
    feats_sum = jnp.sum(x, axis=1)                        # (B, C, H, W)
    pooled = jnp.mean(feats_sum, axis=(2, 3))             # (B, C)
    h1 = jnp.maximum(pooled @ w1.T, 0.0)                  # (B, d)
    logits = (h1 @ w2.T).reshape(B, height, C)
    attn = jax.nn.softmax(logits, axis=1)                 # (B, height, C)
    out = jnp.sum(x * attn[:, :, :, None, None], axis=1)  # (B, C, H, W)
    return out


if __name__ == "__main__":
    B, C, H, W = 2, 8, 16, 16
    height, reduction = 2, 8
    d = max(C // reduction, 4)

    key = jax.random.PRNGKey(0)
    k0, k1, k2, k3 = jax.random.split(key, 4)

    # Deterministic synthetic parameters (Conv2d 1x1, no bias).
    w1 = jax.random.normal(k0, (d, C), dtype=jnp.float32) * 0.1           # (d, C)
    w2 = jax.random.normal(k1, (C * height, d), dtype=jnp.float32) * 0.1  # (C*h, d)

    feat_a = jax.random.normal(k2, (B, C, H, W), dtype=jnp.float32)
    feat_b = jax.random.normal(k3, (B, C, H, W), dtype=jnp.float32)
    in_feats = [feat_a, feat_b]

    out = sk_fusion_pallas(in_feats, w1, w2)
    out = jax.block_until_ready(out)

    ref = sk_fusion_reference(in_feats, w1, w2)
    assert out.shape == (B, C, H, W)
    assert jnp.allclose(out, ref, atol=1e-5, rtol=1e-5), "mismatch vs reference"

    print("KERNEL_OK")
</pallas_src>

<mosaic_0001>
module attributes {stable_mosaic.version = 11 : i64} {
  func.func @_pool_sum_kernel(%arg0: i32, %arg1: i32, %arg2: i32, %arg3: memref<1x8x256xf32, #tpu.memory_space<vmem>>, %arg4: memref<1x8x256xf32, #tpu.memory_space<vmem>>, %arg5: memref<1x1x1x8xf32, #tpu.memory_space<vmem>>, %arg6: memref<8x128xf32, #tpu.memory_space<vmem>>) attributes {dimension_semantics = [#tpu.dimension_semantics<parallel>, #tpu.dimension_semantics<parallel>, #tpu.dimension_semantics<arbitrary>], iteration_bounds = array<i64: 2, 1, 1>, scalar_prefetch = 0 : i64, scratch_operands = 1 : i64, tpu.core_type = #tpu.core_type<tc>, window_params = [{transform_indices = @transform_0, window_bounds = array<i64: 1, 8, 256>}, {transform_indices = @transform_1, window_bounds = array<i64: 1, 8, 256>}, {transform_indices = @transform_2, window_bounds = array<i64: 1, 1, 1, 8>}]} {
    %c0_i32 = arith.constant 0 : i32
    %0 = arith.cmpi eq, %arg2, %c0_i32 : i32
    %1 = arith.extui %0 : i1 to i32
    %c0_i32_0 = arith.constant 0 : i32
    %2 = arith.cmpi ne, %1, %c0_i32_0 : i32
    scf.if %2 {
      %cst = arith.constant 0.000000e+00 : f32
      %17 = vector.broadcast %cst : f32 to vector<8x128xf32>
      %c0_12 = arith.constant 0 : index
      %c0_13 = arith.constant 0 : index
      %18 = vector.load %arg6[%c0_12, %c0_13] : memref<8x128xf32, #tpu.memory_space<vmem>>, vector<8x128xf32>
      tpu.vector_store %arg6[%c0_12, %c0_13], %17 {strides = array<i32>} : memref<8x128xf32, #tpu.memory_space<vmem>>, vector<8x128xf32>,
    } else {
    }
    %c0 = arith.constant 0 : index
    %c0_1 = arith.constant 0 : index
    %c0_2 = arith.constant 0 : index
    %3 = vector.load %arg3[%c0, %c0_1, %c0_2] : memref<1x8x256xf32, #tpu.memory_space<vmem>>, vector<1x8x256xf32>
    %4 = vector.shape_cast %3 : vector<1x8x256xf32> to vector<8x256xf32>
    %c0_3 = arith.constant 0 : index
    %c0_4 = arith.constant 0 : index
    %c0_5 = arith.constant 0 : index
    %5 = vector.load %arg4[%c0_3, %c0_4, %c0_5] : memref<1x8x256xf32, #tpu.memory_space<vmem>>, vector<1x8x256xf32>
    %6 = vector.shape_cast %5 : vector<1x8x256xf32> to vector<8x256xf32>
    %7 = arith.addf %4, %6 : vector<8x256xf32>
    %8 = vector.extract_strided_slice %7 {offsets = [0, 0], sizes = [8, 128], strides = [1, 1]} : vector<8x256xf32> to vector<8x128xf32>
    %9 = vector.extract_strided_slice %7 {offsets = [0, 128], sizes = [8, 128], strides = [1, 1]} : vector<8x256xf32> to vector<8x128xf32>
    %10 = arith.addf %8, %9 : vector<8x128xf32>
    %c0_6 = arith.constant 0 : index
    %c0_7 = arith.constant 0 : index
    %11 = vector.load %arg6[%c0_6, %c0_7] : memref<8x128xf32, #tpu.memory_space<vmem>>, vector<8x128xf32>
    %12 = arith.addf %11, %10 : vector<8x128xf32>
    %c0_8 = arith.constant 0 : index
    %c0_9 = arith.constant 0 : index
    %13 = vector.load %arg6[%c0_8, %c0_9] : memref<8x128xf32, #tpu.memory_space<vmem>>, vector<8x128xf32>
    tpu.vector_store %arg6[%c0_8, %c0_9], %12 {strides = array<i32>} : memref<8x128xf32, #tpu.memory_space<vmem>>, vector<8x128xf32>,
    %c0_i32_10 = arith.constant 0 : i32
    %14 = arith.cmpi eq, %arg2, %c0_i32_10 : i32
    %15 = arith.extui %14 : i1 to i32
    %c0_i32_11 = arith.constant 0 : i32
    %16 = arith.cmpi ne, %15, %c0_i32_11 : i32
    scf.if %16 {
      %c0_12 = arith.constant 0 : index
      %c0_13 = arith.constant 0 : index
      %17 = vector.load %arg6[%c0_12, %c0_13] : memref<8x128xf32, #tpu.memory_space<vmem>>, vector<8x128xf32>
      %cst = arith.constant dense<0.000000e+00> : vector<8xf32>
      %18 = vector.multi_reduction <add>, %17, %cst [1] : vector<8x128xf32> to vector<8xf32>
      %19 = vector.shape_cast %18 : vector<8xf32> to vector<1x1x1x8xf32>
      %c0_14 = arith.constant 0 : index
      %c0_15 = arith.constant 0 : index
      %c0_16 = arith.constant 0 : index
      %c0_17 = arith.constant 0 : index
      %20 = vector.load %arg5[%c0_14, %c0_15, %c0_16, %c0_17] : memref<1x1x1x8xf32, #tpu.memory_space<vmem>>, vector<1x1x1x8xf32>
      tpu.vector_store %arg5[%c0_14, %c0_15, %c0_16, %c0_17], %19 {strides = array<i32>} : memref<1x1x1x8xf32, #tpu.memory_space<vmem>>, vector<1x1x1x8xf32>,
    } else {
    }
    return
  }
  func.func @transform_0(%arg0: i32, %arg1: i32, %arg2: i32) -> (i32, i32, i32) {
    %c1_i32 = arith.constant 1 : i32
    %0 = arith.muli %arg1, %c1_i32 : i32
    %1 = arith.addi %0, %arg2 : i32
    %c0_i32 = arith.constant 0 : i32
    %2 = arith.minsi %1, %c0_i32 : i32
    %c0_i32_0 = arith.constant 0 : i32
    %c0_i32_1 = arith.constant 0 : i32
    return %arg0, %c0_i32_0, %2 : i32, i32, i32
  }
  func.func @transform_1(%arg0: i32, %arg1: i32, %arg2: i32) -> (i32, i32, i32) {
    %c1_i32 = arith.constant 1 : i32
    %0 = arith.muli %arg1, %c1_i32 : i32
    %1 = arith.addi %0, %arg2 : i32
    %c0_i32 = arith.constant 0 : i32
    %2 = arith.minsi %1, %c0_i32 : i32
    %c0_i32_0 = arith.constant 0 : i32
    %c0_i32_1 = arith.constant 0 : i32
    return %arg0, %c0_i32_0, %2 : i32, i32, i32
  }
  func.func @transform_2(%arg0: i32, %arg1: i32, %arg2: i32) -> (i32, i32, i32, i32) {
    %c0_i32 = arith.constant 0 : i32
    %c0_i32_0 = arith.constant 0 : i32
    %c0_i32_1 = arith.constant 0 : i32
    return %arg0, %arg1, %c0_i32, %c0_i32_0 : i32, i32, i32, i32
  }
}

</mosaic_0001>

<bundles_post_ra>
// kernel: tpu_custom_call.1
= control target key start
LH: loop header
LB: loop body
LE: loop exit
PB: predicated region body
PF: predicated region fallthrough
CT: control target
= control target key end

     0   :  { %7 = vsyncpa [#allocation4], 0  ;;  %s811_s0 = inlined_call_operand.hbm [shape: f32[2,8,256], index: 0, kind: input, shape index: {}]   ;;  %s812_s1 = inlined_call_operand.hbm [shape: f32[2,8,256], index: 1, kind: input, shape index: {}]   ;;  %s813_s2 = inlined_call_operand.hbm [shape: f32[2,1,1,8], index: 2, kind: output, shape index: {}]  }
   0x1   :  { %9 = vsyncpa [#allocation4 + $0x1], 0 }
   0x2   :  { %10 = vsyncpa [#allocation7], 0 }
   0x3   :  { %12 = vsyncpa [#allocation7 + $0x1], 0 }
   0x4   :  { %13 = vsyncpa [#allocation5], 0 }
   0x5   :  { %15 = vsyncpa [#allocation5 + $0x1], 0  ;;  %s649_s9 = smov 0   ;;  %s651_s10 = smov 0  }
   0x6   :  { %s653_s11 = smov 0   ;;  %s655_s12 = smov 0  }
   0x7   :  { %s657_s13 = smov 0   ;;  %s659_s14 = smov 0  }
   0x8 LB: > { %s404_s15 = sadd.s32 4294967295, %s629_s14   ;;  %s405_s16 = sadd.s32 4294967294, %s629_s14   ;;  %s629_s14 = sphi %s659_s14, %s21_s14   ;;  %s625_s13 = sphi %s657_s13, %s825_s13   ;;  %s621_s12 = sphi %s655_s12, %s824_s12   ;;  %s617_s11 = sphi %s653_s11, %s823_s11   ;;  %s613_s10 = sphi %s651_s10, %s822_s10   ;;  %s609_s9 = sphi %s649_s9, %s821_s9  }
   0x9   : > { %s40_s17 = sadd.s32 1, %s625_s13  ;;  %s55_s18 = sadd.s32 1, %s617_s11 }
   0xa   : > { %p42_p0 = scmp.ge.s32.totalorder %s40_s17, 2  ;;  %p62_p1 = scmp.ne.s32.totalorder %s617_s11, %s613_s10 }
   0xb   : > { %p63_p2 = scmp.eq.s32.totalorder %s629_s14, 0  ;;  %p68_p3 = scmp.ne.s32.totalorder %s613_s10, %s609_s9 }
   0xc   : > { %s827_s17 = smov (%p42_p0, %s40_s17), 0  ;;  %p69_p5 = scmp.eq.s32.totalorder %s404_s15, 0 }
   0xd   : > { %p690_p4 = por %p63_p2, %p62_p1  ;;  %s50_s20 = ssub.s32 %s625_s13, %s827_s17 }
   0xe   : > { %p128_p6 = scmp.eq.s32.totalorder %s404_s15, 1  ;;  %p53_p7 = scmp.eq.s32.totalorder %s50_s20, 0 }
   0xf   : > { %p696_p8 = por %p69_p5, %p68_p3  ;;  %p134_p10 = scmp.eq.s32.totalorder %s405_s16, 1 }
  0x10   : > { %p700_p9 = por %p128_p6, %p62_p1  ;;  %p439_p13 = scmp.lt.s32.totalorder %s629_s14, 2 }
  0x11   : > { %s705_s23 = scalar_select %p53_p7, %s617_s11, %s55_s18  }
  0x12   : > { %p707_p11 = por %p134_p10, %p68_p3  ;;  %s714_s25 = sand.u32 1, %s617_s11  }
  0x13   : > { %s408_s26 = sshll.u32 %s714_s25, 4  ;;  %s420_s27 = sshll.u32 %s625_s13, 8 }
  0x14   : > { %s169_s30 = scalar_lea.hbm %s811_s0, %s420_s27  ;;  %s158_s3 = scalar_lea.vmem [#allocation3], %s408_s26 }
  0x15   : > { %s171_s4 = sshll.u32 %s158_s3, 4  ;;  %p723_p0 = pnand %p439_p13, %p690_p4  ;;  %s172_s4 = int_to_ptr.vmem [resolvable:$true] %s171_s4 }
  0x16   : > { %p414_p1 = scmp.ge.s32.totalorder %s629_s14, 1  ;;  %p200_p2 = scmp.lt.s32.totalorder %s629_s14, 3 }
  0x17   : > { %s155_s6 = scalar_lea.sflag [#allocation4], %s714_s25  ;;  %p491_p3 = pneg %p723_p0 }
  0x18   : > { %s502_s7 = scalar_lea.vmem %s172_s4, 256  ;;  %s631_s8 = smov [#allocation3]  }
  0x19   : > { %p503_p5 = scmp.ne.s32.totalorder %s172_s4, %s502_s7  ;;  %s507_s15 = sshll.u32 %s631_s8, 4  ;;  %s508_s15 = int_to_ptr.vmem [resolvable:$false] %s507_s15 }
  0x1a   : > { %s509_s16 = scalar_lea.vmem %s508_s15, 512  ;;  %p510_p4 = scmp.lt.s32.totalorder %s172_s4, %s508_s15 }
  0x1b   : > { %p505_p6 = pnand %p503_p5, %p491_p3  ;;  %p511_p10 = scmp.lt.s32.totalorder %s509_s16, %s502_s7 }
  0x1d   : > { %p506_p7 = pneg %p505_p6  ;;  %p512_p13 = por %p511_p10, %p510_p4 }
  0x1f   : > { %p513_p12 = pnand %p512_p13, %p506_p7 }
  0x21   : > { %516 = shalt.err (!%p513_p12)
}
  0x22   : > { %431 = dma.hbm_to_vmem [thread:$0]  (!%p723_p0), %s169_s30, 256, %s172_s4, %s155_s6  }
  0x23   : > { %p741_p5 = pnand %p414_p1, %p200_p2  ;;  %s193_s28 = scalar_lea.hbm %s812_s1, %s420_s27 }
  0x24   : > { %s182_s29 = scalar_lea.vmem [#allocation6], %s408_s26  ;;  %s179_s7 = scalar_lea.sflag [#allocation7], %s714_s25 }
  0x25   : > { %s195_s3 = sshll.u32 %s182_s29, 4  ;;  %s632_s30 = smov [#allocation6]   ;;  %s196_s3 = int_to_ptr.vmem [resolvable:$true] %s195_s3 }
  0x26   : > { %s530_s8 = scalar_lea.vmem %s196_s3, 256  ;;  %s535_s4 = sshll.u32 %s632_s30, 4  ;;  %s536_s4 = int_to_ptr.vmem [resolvable:$false] %s535_s4 }
  0x27   : > { %p531_p12 = scmp.ne.s32.totalorder %s196_s3, %s530_s8  ;;  %s537_s6 = scalar_lea.vmem %s536_s4, 512 }
  0x28   : > { %p538_p1 = scmp.lt.s32.totalorder %s196_s3, %s536_s4  ;;  %p539_p2 = scmp.lt.s32.totalorder %s537_s6, %s530_s8 }
  0x29   : > { %p533_p6 = pnand %p531_p12, %p491_p3 }
  0x2a   : > { %p540_p4 = por %p539_p2, %p538_p1 }
  0x2b   : > { %p534_p7 = pneg %p533_p6 }
  0x2d   : > { %p541_p10 = pnand %p540_p4, %p534_p7 }
  0x2f   : > { %544 = shalt.err (!%p541_p10)
}
  0x30   : > { %434 = dma.hbm_to_vmem [thread:$0]  (!%p723_p0), %s193_s28, 256, %s196_s3, %s179_s7  }
  0x31   : > { %204 = sbr.rel (%p741_p5) target bundleno = 216 (0xd8), region = 28  ;;  %s757_s25 = sand.u32 (!%p741_p5), 1, %s613_s10  }
  0x32   : > { %s415_s26 = sshll.u32 (!%p741_p5), %s757_s25, 4  ;;  %s207_s27 = scalar_lea.sflag (!%p741_p5), [#allocation4], %s757_s25 }
  0x33   : > { %s210_s15 = scalar_lea.vmem (!%p741_p5), [#allocation3], %s415_s26 }
  0x36   : > { %596 = dma.done.wait (%p696_p8), %s207_s27, 256  }
  0x37   : > { %598 = vsyncadd (%p696_p8), %s207_s27, 4294967040  ;;  %s216_s5 = scalar_lea.sflag [#allocation7], %s757_s25  ;;  %s219_s16 = scalar_lea.vmem [#allocation6], %s415_s26 }
  0x38   : > { %600 = dma.done.wait (%p696_p8), %s216_s5, 256  }
  0x39   : > { %602 = vsyncadd (%p696_p8), %s216_s5, 4294967040  ;;  %v257_v0 = vld [vmem:[%s210_s15] sm:$0xff]  ;;  %v258_v1 = vld [vmem:[%s210_s15 + $0x8] sm:$0xff]  ;;  %v274_v7 = vlaneseq  ;;  %s417_s18 = sshll.u32 %s621_s12, 4  ;;  %s243_s19 = scalar_lea.vmem [#allocation8], %s757_s25  ;;  %vm281_vm0 = vcmask 57344  }
  0x3a   : > { %v259_v2 = vld [vmem:[%s219_s16] sm:$0xff]  ;;  %v260_v3 = vld [vmem:[%s219_s16 + $0x8] sm:$0xff]  ;;  %s297_s21 = sshll.u32 %s243_s19, 4  ;;  %s295_s29 = scalar_lea.hbm %s813_s2, %s417_s18  ;;  %s298_s21 = int_to_ptr.vmem [resolvable:$true] %s297_s21 }
  0x3b   : > { %v261_v4 = vadd.f32 %v259_v2, %v257_v0  ;;  %v262_v5 = vadd.f32 %v260_v3, %v258_v1  ;;  %v275_v8 = vand.u32 127, %v274_v7  ;;  %v277_v9 = vshrl.u32 %v274_v7, 7  ;;  %s284_s3 = scalar_lea.sflag [#allocation5], %s757_s25  ;;  %s545_s7 = scalar_lea.vmem %s298_s21, 16 }
  0x3c   : > { %p546_p8 = scmp.ne.s32.totalorder %s298_s21, %s545_s7  ;;  %s633_s8 = smov [#allocation8]  }
  0x3d   : > { %v263_v6 = vadd.f32 %v262_v5, %v261_v4  ;;  %v278_v10 = vsub.s32 %v275_v8, %v277_v9  ;;  %s549_s30 = sshll.u32 %s633_s8, 4  ;;  %s550_s30 = int_to_ptr.vmem [resolvable:$false] %s549_s30 }
  0x3e   : > { %p547_p0 = pnand %p546_p8, %p700_p9  ;;  %s551_s12 = scalar_lea.vmem %s550_s30, 32 }
  0x3f   : > { %271 = vadd.xlane.f32.xlu0 %v263_v6  ;;  %p552_p13 = scmp.lt.s32.totalorder %s298_s21, %s550_s30  ;;  %p553_p5 = scmp.lt.s32.totalorder %s551_s12, %s545_s7 }
  0x40   : > { %p548_p3 = pneg %p547_p0 }
  0x41   : > { %p554_p12 = por %p553_p5, %p552_p13 }
  0x43   : > { %p555_p6 = pnand %p554_p12, %p548_p3 }
  0xc8   : > { %v272_v11 = vpop.xlane.xlu0 %271 }
  0xc9   : > { %v279_v12 = vrot.slane %v272_v11, %v278_v10 }
  0xcb   : > { %282 = vst.msk [vmem:[%s243_s19] sm:$0x1] %vm281_vm0, %v279_v12 }
  0xcc   : > { %558 = shalt.err (!%p555_p6)
}
  0xcd   : > { %s559_s4 = scalar_lea.hbm %s295_s29, 16  ;;  %s563_s26 = scalar_lea.hbm %s813_s2, 32 }
  0xce   : > { %p560_p7 = scmp.ne.s32.totalorder %s295_s29, %s559_s4  ;;  %p564_p4 = scmp.lt.s32.totalorder %s295_s29, %s813_s2 }
  0xcf   : > { %p565_p10 = scmp.lt.s32.totalorder %s563_s26, %s559_s4 }
  0xd0   : > { %p561_p1 = pnand %p560_p7, %p700_p9 }
  0xd1   : > { %p566_p8 = por %p565_p10, %p564_p4 }
  0xd2   : > { %p562_p2 = pneg %p561_p1 }
  0xd4   : > { %p567_p0 = pnand %p566_p8, %p562_p2 }
  0xd6   : > { %570 = shalt.err (!%p567_p0)
}
  0xd7   : > { %426 = dma.vmem_to_hbm [thread:$0]  (%p700_p9), %s298_s21, 16, %s295_s29, %s284_s3  }
  0xd8 PF: > { %s309_s5 = sand.u32 1, %s609_s9   ;;  %p820_p3 = scmp.ge.s32.totalorder %s629_s14, 2 }
  0xd9   : > { %s310_s16 = scalar_lea.sflag [#allocation5], %s309_s5 }
  0xda   : > { %p436_p13 = pnand %p820_p3, %p707_p11 }
  0xdc   : > { %p437_p5 = pneg %p436_p13 }
  0xde   : > { %604 = dma.done.wait (%p437_p5), %s310_s16, 16  }
  0xdf   : > { %606 = vsyncadd (%p437_p5), %s310_s16, 4294967280  ;;  %s21_s14 = sadd.s32 1, %s629_s14   ;;  %s821_s9 = smov %s613_s10 }
  0xe0   : > { %p18_p12 = scmp.ge.s32.totalorder %s21_s14, 4   ;;  %s822_s10 = smov %s617_s11 }
  0xe1   : > { %s823_s11 = smov %s705_s23  ;;  %s824_s12 = smov %s625_s13 }
  0xe2   : > { %s825_s13 = smov %s827_s17  ;;  %20 = sbr.rel (!%p18_p12) target bundleno = 8 (0x8), region = 94 }
  0xe7   :  { %314 = vsyncpa [#allocation4], 1 }
  0xe8   :  { %316 = vsyncpa [#allocation4 + $0x1], 1 }
  0xe9   :  { %317 = vsyncpa [#allocation7], 1 }
  0xea   :  { %319 = vsyncpa [#allocation7 + $0x1], 1 }
  0xeb   :  { %320 = vsyncpa [#allocation5], 1 }
  0xec   :  { %322 = vsyncpa [#allocation5 + $0x1], 1 }

</bundles_post_ra>
